<compile_context>
chip_gen: v6e
topology: v6e:2x2x1
jax: 0.10.0
libtpu: 0.0.40
codegen_flags: <defaults>
</compile_context>

<pallas_src>
import functools

import jax
import jax.numpy as jnp
from jax.experimental import pallas as pl
from jax.experimental.pallas import tpu as pltpu

WEIGHT = 6.0


def _step_loss_kernel(op_ref, tgt_ref, partial_ref, *, batch, block_rows,
                      need_row_mask):
    # op_ref:      (TB, C) input dtype, VMEM
    # tgt_ref:     (TB, 1) int32, VMEM
    # partial_ref: (1, 128) float32, VMEM (per-block partial sum, lane-dense)
    tb, c = op_ref.shape

    x = op_ref[...].astype(jnp.float32) * WEIGHT       # in-VMEM cast, VPU mul
    x = x - jnp.max(x, axis=1, keepdims=True)          # numerically-stable shift
    e = jnp.exp(x)                                     # EUP: per-element floor
    denom = jnp.sum(e, axis=1, keepdims=True)          # (TB, 1)

    # One-hot select of the target column of `e` BEFORE normalizing.
    col = jax.lax.broadcasted_iota(jnp.int32, (tb, c), 1)
    e_t = jnp.sum(jnp.where(col == tgt_ref[...], e, 0.0), axis=1, keepdims=True)

    # Only TB values left -> exact reciprocal is cheap and bit-accurate.
    s = e_t * pl.reciprocal(denom, approx=False)       # softmax[i, target[i]]

    if need_row_mask:
        # Zero out padded rows of a partial final block (B % TB != 0).  Any
        # NaN/garbage in the padded region is discarded by the select.
        row = (jax.lax.broadcasted_iota(jnp.int32, (tb, 1), 0)
               + pl.program_id(0) * block_rows)
        s = jnp.where(row < batch, s, 0.0)

    total = jnp.sum(s, axis=0, keepdims=True)          # (1, 1)
    partial_ref[...] = jnp.broadcast_to(total, (1, 128))


def _pick_block_rows(batch, classes, dtype):
    """Largest row tile (multiple of 8, <= 1024) whose op block is <= ~6 MiB."""
    itemsize = jnp.dtype(dtype).itemsize
    budget = 6 * 1024 * 1024
    tb = (budget // max(1, classes * itemsize)) // 8 * 8
    tb = max(8, min(1024, tb))
    return batch if tb >= batch else tb


def step_loss(op: jax.Array, target: jax.Array, *, block_rows=None) -> jax.Array:
    """op: [B, C] float (any float dtype), target: [B] int -> (1,) float32."""
    B, C = op.shape
    if block_rows is None:
        block_rows = _pick_block_rows(B, C, op.dtype)
    num_blocks = pl.cdiv(B, block_rows)

    tgt_2d = target.astype(jnp.int32).reshape(B, 1)
    kernel = functools.partial(
        _step_loss_kernel,
        batch=B,
        block_rows=block_rows,
        need_row_mask=(B % block_rows != 0),
    )

    partials = pl.pallas_call(
        kernel,
        out_shape=jax.ShapeDtypeStruct((num_blocks, 128), jnp.float32),
        grid=(num_blocks,),
        in_specs=[
            pl.BlockSpec((block_rows, C), lambda i: (i, 0)),
            pl.BlockSpec((block_rows, 1), lambda i: (i, 0)),
        ],
        out_specs=pl.BlockSpec((1, 128), lambda i: (i, 0)),
        compiler_params=pltpu.CompilerParams(
            dimension_semantics=("parallel",)),
    )(op, tgt_2d)

    # loss = (1/B) * sum_i (1 - softmax[i, t_i]) = 1 - sum_i softmax[i, t_i] / B
    loss = 1.0 - partials[:, 0].sum() / jnp.float32(B)
    return loss.reshape(1).astype(jnp.float32)


def _reference(op, target):
    """Pure-JAX reference mirroring the PyTorch forward."""
    op = op.astype(jnp.float32) * WEIGHT
    op = op - jnp.max(op, axis=1, keepdims=True)
    e = jnp.exp(op)
    sm = 1.0 - e / jnp.sum(e, axis=1, keepdims=True)
    B = op.shape[0]
    picked = sm[jnp.arange(B), target]
    return (jnp.sum(picked) / B).reshape(1)


if __name__ == "__main__":
    key = jax.random.PRNGKey(0)
    k_op, k_tgt, k_op2, k_tgt2 = jax.random.split(key, 4)

    # Case 1: small f32 input, single block (no padded-row masking emitted).
    B, C = 8, 32
    op = jax.random.normal(k_op, (B, C), dtype=jnp.float32)
    target = jax.random.randint(k_tgt, (B,), 0, C, dtype=jnp.int32)

    loss = step_loss(op, target)
    jax.block_until_ready(loss)
    ref = _reference(op, target)
    assert loss.shape == (1,)
    assert jnp.allclose(loss, ref, atol=1e-5, rtol=1e-5), (loss, ref)

    # Case 2: bf16 fed straight into the kernel (no wrapper cast), batch not a
    # multiple of the tile -> exercises the grid + padded-row masking.
    B2, C2 = 20, 32
    op2 = jax.random.normal(k_op2, (B2, C2), dtype=jnp.bfloat16)
    target2 = jax.random.randint(k_tgt2, (B2,), 0, C2, dtype=jnp.int32)

    loss2 = step_loss(op2, target2, block_rows=8)      # grid = 3 blocks
    jax.block_until_ready(loss2)
    ref2 = _reference(op2, target2)
    assert loss2.shape == (1,)
    assert jnp.allclose(loss2, ref2, atol=1e-5, rtol=1e-5), (loss2, ref2)

    print("KERNEL_OK")
</pallas_src>

<mosaic_0001>
module attributes {stable_mosaic.version = 11 : i64} {
  func.func @_step_loss_kernel(%arg0: i32, %arg1: memref<8x32xf32, #tpu.memory_space<vmem>>, %arg2: memref<8x1xi32, #tpu.memory_space<vmem>>, %arg3: memref<1x128xf32, #tpu.memory_space<vmem>>) attributes {dimension_semantics = [#tpu.dimension_semantics<parallel>], iteration_bounds = array<i64: 1>, scalar_prefetch = 0 : i64, scratch_operands = 0 : i64, tpu.core_type = #tpu.core_type<tc>, window_params = [{transform_indices = @transform_0, window_bounds = array<i64: 8, 32>}, {transform_indices = @transform_1, window_bounds = array<i64: 8, 1>}, {transform_indices = @transform_2, window_bounds = array<i64: 1, 128>}]} {
    %c0 = arith.constant 0 : index
    %c0_0 = arith.constant 0 : index
    %0 = vector.load %arg1[%c0, %c0_0] : memref<8x32xf32, #tpu.memory_space<vmem>>, vector<8x32xf32>
    %cst = arith.constant 6.000000e+00 : f32
    %1 = vector.broadcast %cst : f32 to vector<8x32xf32>
    %2 = arith.mulf %0, %1 : vector<8x32xf32>
    %cst_1 = arith.constant dense<0xFF800000> : vector<8xf32>
    %3 = vector.multi_reduction <maximumf>, %2, %cst_1 [1] : vector<8x32xf32> to vector<8xf32>
    %4 = vector.shape_cast %3 : vector<8xf32> to vector<8x1xf32>
    %5 = vector.broadcast %4 : vector<8x1xf32> to vector<8x32xf32>
    %6 = arith.subf %2, %5 : vector<8x32xf32>
    %7 = math.exp %6 : vector<8x32xf32>
    %cst_2 = arith.constant dense<0.000000e+00> : vector<8xf32>
    %8 = vector.multi_reduction <add>, %7, %cst_2 [1] : vector<8x32xf32> to vector<8xf32>
    %9 = vector.shape_cast %8 : vector<8xf32> to vector<8x1xf32>
    %10 = tpu.iota {dimensions = array<i32: 1>} : vector<8x32xi32>
    %c0_3 = arith.constant 0 : index
    %c0_4 = arith.constant 0 : index
    %11 = vector.load %arg2[%c0_3, %c0_4] : memref<8x1xi32, #tpu.memory_space<vmem>>, vector<8x1xi32>
    %12 = vector.broadcast %11 : vector<8x1xi32> to vector<8x32xi32>
    %13 = arith.cmpi eq, %10, %12 : vector<8x32xi32>
    %cst_5 = arith.constant 0.000000e+00 : f32
    %14 = vector.broadcast %cst_5 : f32 to vector<8x32xf32>
    %15 = arith.select %13, %7, %14 : vector<8x32xi1>, vector<8x32xf32>
    %cst_6 = arith.constant dense<0.000000e+00> : vector<8xf32>
    %16 = vector.multi_reduction <add>, %15, %cst_6 [1] : vector<8x32xf32> to vector<8xf32>
    %17 = vector.shape_cast %16 : vector<8xf32> to vector<8x1xf32>
    %18 = tpu.reciprocal %9 : vector<8x1xf32> -> vector<8x1xf32>
    %19 = arith.mulf %17, %18 : vector<8x1xf32>
    %cst_7 = arith.constant dense<0.000000e+00> : vector<1xf32>
    %20 = vector.multi_reduction <add>, %19, %cst_7 [0] : vector<8x1xf32> to vector<1xf32>
    %21 = vector.shape_cast %20 : vector<1xf32> to vector<1x1xf32>
    %22 = vector.shape_cast %21 : vector<1x1xf32> to vector<1x1xf32>
    %23 = vector.broadcast %22 : vector<1x1xf32> to vector<1x128xf32>
    %c0_8 = arith.constant 0 : index
    %c0_9 = arith.constant 0 : index
    %24 = vector.load %arg3[%c0_8, %c0_9] : memref<1x128xf32, #tpu.memory_space<vmem>>, vector<1x128xf32>
    tpu.vector_store %arg3[%c0_8, %c0_9], %23 {strides = array<i32>} : memref<1x128xf32, #tpu.memory_space<vmem>>, vector<1x128xf32>,
    return
  }
  func.func @transform_0(%arg0: i32) -> (i32, i32) {
    %c0_i32 = arith.constant 0 : i32
    %c0_i32_0 = arith.constant 0 : i32
    return %arg0, %c0_i32 : i32, i32
  }
  func.func @transform_1(%arg0: i32) -> (i32, i32) {
    %c0_i32 = arith.constant 0 : i32
    %c0_i32_0 = arith.constant 0 : i32
    return %arg0, %c0_i32 : i32, i32
  }
  func.func @transform_2(%arg0: i32) -> (i32, i32) {
    %c0_i32 = arith.constant 0 : i32
    %c0_i32_0 = arith.constant 0 : i32
    return %arg0, %c0_i32 : i32, i32
  }
}

</mosaic_0001>

<bundles_post_ra>
// kernel: tpu_custom_call.1
= control target key start
LH: loop header
LB: loop body
LE: loop exit
PB: predicated region body
PF: predicated region fallthrough
CT: control target
= control target key end

     0   :  { %vm14_vm0 = vcmask 261120   ;;  %s116_s0 = inlined_call_operand.vmem [shape: f32[8,32], index: 0, kind: input, shape index: {}]   ;;  %s117_s1 = inlined_call_operand.vmem [shape: s32[8,1], index: 1, kind: input, shape index: {}]   ;;  %s118_s2 = inlined_call_operand.hbm [shape: f32[1,128], index: 2, kind: output, shape index: {}]  }
   0x1   :  { %v12_v0 = vld [vmem:[%s116_s0] sm:$0xff] }
   0x2   :  { %7 = vsyncpa [#allocation3], 0  ;;  %v13_v1 = vmul.f32 6.0, %v12_v0  ;;  %v87_v2 = vmov 0   ;;  %v26_v4 = vld [vmem:[%s117_s1] sm:$0xff]  ;;  %v24_v8 = vlaneseq  ;;  %s88_s0 = smov [#allocation2]  }
   0x3   :  { %60 = vset.pattern.permute.xlu0 %v87_v2  ;;  %s50_s1 = sshll.u32 %s88_s0, 4  ;;  %s51_s1 = int_to_ptr.vmem [resolvable:$true] %s50_s1 }
   0x4   :  { %v15_v3 = vsel %vm14_vm0, %v13_v1, -inf  ;;  %v25_v9 = vand.u32 127, %v24_v8  ;;  %s65_s13 = scalar_lea.vmem %s51_s1, 16  ;;  %s69_s14 = scalar_lea.vmem %s51_s1, 32 }
   0x5   :  { %16 = vmax.xlane.f32.xlu0 %v15_v3  ;;  %p66_p0 = scmp.ne.s32.totalorder %s51_s1, %s65_s13  ;;  %p70_p1 = scmp.lt.s32.totalorder %s51_s1, %s51_s1 }
   0x6   :  { %p71_p2 = scmp.lt.s32.totalorder %s69_s14, %s65_s13 }
   0x8   :  { %p72_p3 = por %p71_p2, %p70_p1 }
   0xa   :  { %p73_p4 = pnand %p72_p3, %p66_p0 }
  0x1b   :  { %28 = vperm.xlu0 %60, %v26_v4  }
  0x8e   :  { %v17_v5 = vpop.xlane.xlu0 %16 }
  0x8f   :  { %v18_v6 = vsub.f32 %v13_v1, %v17_v5 }
  0x91   :  { %v19_v7 = vmul.f32 1.442695, %v18_v6 }
  0x93   :  { %61 = vpow2.f32 %v19_v7 }
  0x96   :  { %v29_v10 = vpop.permute.xlu0 %28 }
  0x97   :  { %vm30_vm1 = vcmp.eq.s32.totalorder %v25_v9, %v29_v10 }
  0xa0   :  { %v62_v11 = vpop.eup %61 }
  0xa1   :  { %v21_v12 = vsel %vm14_vm0, %v62_v11, 0.0  ;;  %v31_v13 = vsel %vm30_vm1, %v62_v11, 0.0 }
  0xa2   :  { %22 = vadd.xlane.f32.xlu1 %v21_v12  ;;  %v32_v14 = vsel %vm14_vm0, %v31_v13, 0.0 }
  0xa6   :  { %33 = vadd.xlane.f32.xlu1 %v32_v14 }
 0x12b   :  { %v23_v15 = vpop.xlane.xlu1 %22 }
 0x12c   :  { %63 = vrcp.f32 %v23_v15 }
 0x12f   :  { %v34_v17 = vpop.xlane.xlu1 %33 }
 0x139   :  { %v64_v16 = vpop.eup %63 }
 0x13a   :  { %v36_v18 = vmul.f32 %v64_v16, %v34_v17 }
 0x13c   :  { %v37_v19 = vrot.slane %v36_v18, 4 }
 0x13e   :  { %v38_v20 = vadd.f32 %v37_v19, %v36_v18 }
 0x140   :  { %v39_v21 = vrot.slane %v38_v20, 2 }
 0x142   :  { %v40_v22 = vadd.f32 %v39_v21, %v38_v20 }
 0x144   :  { %v41_v23 = vrot.slane %v40_v22, 1 }
 0x146   :  { %v42_v24 = vadd.f32 %v41_v23, %v40_v22 }
 0x148   :  { %43 = vst [vmem:[#allocation2] sm:$0x1] %v42_v24 }
 0x149   :  { %76 = shalt.err (!%p73_p4)
}
 0x14a   :  { %53 = dma.vmem_to_hbm [thread:$0]  %s51_s1, 16, %s118_s2, [#allocation3]  }
 0x14b   :  { %85 = dma.done.wait [#allocation3], 16  }
 0x14c   :  { %86 = vsyncadd [#allocation3], 4294967280 }
 0x14d   :  { %57 = vsyncpa [#allocation3], 1 }

</bundles_post_ra>
